<compile_context>
chip_gen: v7x
topology: tpu7x:2x2x1
jax: 0.10.0
libtpu: 0.0.40
codegen_flags: <defaults>
</compile_context>

<pallas_src>
import jax
import jax.numpy as jnp
from jax.experimental import pallas as pl
from jax.experimental.pallas import tpu as pltpu

# ---- shapes / config -------------------------------------------------------
S, B, H = 8, 2, 32          # seq, batch, hidden_size
NH = 4                      # num_attention_heads
NCOMB = 2                   # num_combined_heads
NFFN = NH // NCOMB          # number of grouped FFNs
HPH = H // NH               # hidden_per_head
FFN_MULT = 4                # combined_FFN_multiple (must be even)
D_IN = NCOMB * HPH          # per-group FFN input width   (16)
D_HID = FFN_MULT * D_IN     # dense_in output width        (64)
D_HALF = D_HID // 2         # GLU half width               (32)
EPS = 1e-12                 # norm_eps
NORM_FACTOR = float(HPH) ** -0.5   # rsqrt(hidden_per_head)
BS = B * S

GLU_W = NFFN * D_HALF       # 64  : GLU activation width == FFN-out input width
FFN_IN_W = 2 * GLU_W        # 128 : fused (x|y) dense_in output width

# weight-slab row bands (all 8-row aligned) and vector-slab rows
W_ROWS = 2 * H + GLU_W      # 128
ROW_QKV = 0                 # rows [0:32)   cols [0:96)   fused QKV weight
ROW_XY = H                  # rows [32:64)  cols [0:128)  fused FFN-in (x|y) weight
ROW_OD = 2 * H              # rows [64:128) cols [0:32)   folded FFN-out @ attention_dense
V_BQKV, V_BXY, V_BOD, V_G1, V_B1, V_G2, V_B2 = range(7)


def _layernorm(x, g, b):
    mu = jnp.mean(x, axis=-1, keepdims=True)
    var = jnp.mean((x - mu) ** 2, axis=-1, keepdims=True)
    return (x - mu) * jax.lax.rsqrt(var + EPS) * g + b


# ---- kernel ----------------------------------------------------------------
def transformer_layer_kernel(x_ref, w_ref, v_ref, out_ref, scores_ref):
    # x_ref: [B*S, H], rows ordered b*S + s (wrapper transposes [S,B,H] -> [B,S,H]).
    x2d = x_ref[...]
    xn = _layernorm(x2d, v_ref[V_G1, 0:H], v_ref[V_B1, 0:H])                 # norm1, [BS, H]

    # fused QKV: one MXU push, 96-lane output.
    qkv = (jnp.dot(xn, w_ref[ROW_QKV:ROW_QKV + H, 0:3 * H],
                   preferred_element_type=jnp.float32)
           + v_ref[V_BQKV, 0:3 * H])                                         # [BS, 3H]

    # Gather heads into a single [B*NH, S, HPH] batch (b-major then head => torch bmm order).
    # Only minor-dim-preserving reshapes + leading-dim stack/folds (safe Mosaic relayouts).
    def heads(base):
        return jnp.stack(
            [qkv[:, base + h * HPH: base + (h + 1) * HPH].reshape(B, S, HPH)
             for h in range(NH)], axis=1).reshape(B * NH, S, HPH)

    qh, kh, vh = heads(0), heads(H), heads(2 * H)

    # scores = (q @ k^T) * norm_factor (torch-softmax branch), one batched contraction.
    scores = jnp.einsum('bqd,bkd->bqk', qh, kh,
                        preferred_element_type=jnp.float32) * NORM_FACTOR    # [B*NH, S, S]
    scores_ref[...] = scores            # single store, already torch bmm layout

    # softmax over keys (TorchSoftmax, fp32, exact divide).
    m = jnp.max(scores, axis=-1, keepdims=True)
    e = jnp.exp(scores - m)
    p = e / jnp.sum(e, axis=-1, keepdims=True)
    ctx = jnp.einsum('bqk,bkd->bqd', p, vh,
                     preferred_element_type=jnp.float32)                     # [B*NH, S, HPH]

    # scatter heads back to the lane dim: [B*NH,S,HPH] -> [BS, H] (heads contiguous in H).
    ctx4 = ctx.reshape(B, NH, S, HPH)
    ctx2d = jnp.concatenate([ctx4[:, h].reshape(BS, HPH) for h in range(NH)], axis=-1)

    # residual against the NORMED hidden states (reference quirk), norm2 over full H.
    res = xn + ctx2d
    h2 = _layernorm(res, v_ref[V_G2, 0:H], v_ref[V_B2, 0:H])

    # fused grouped-GLU FFN-in: one 128-lane matmul, then x * relu(y).
    xy = (jnp.dot(h2, w_ref[ROW_XY:ROW_XY + H, :],
                  preferred_element_type=jnp.float32) + v_ref[V_BXY, :])     # [BS, 128]
    glu = xy[:, :GLU_W] * jnp.maximum(xy[:, GLU_W:], 0.0)                    # [BS, 64]

    # FFN-out projection folded with attention_dense (w_od = wo @ wd, b_od = bo @ wd + bd).
    out_ref[...] = (jnp.dot(glu, w_ref[ROW_OD:ROW_OD + GLU_W, 0:H],
                            preferred_element_type=jnp.float32)
                    + v_ref[V_BOD, 0:H])                                     # [BS, H]


# ---- wrapper ---------------------------------------------------------------
def _block_diag(blocks):
    rows = sum(b.shape[0] for b in blocks)
    cols = sum(b.shape[1] for b in blocks)
    out = jnp.zeros((rows, cols), blocks[0].dtype)
    r = c = 0
    for b in blocks:
        out = out.at[r:r + b.shape[0], c:c + b.shape[1]].set(b)
        r += b.shape[0]
        c += b.shape[1]
    return out


def transformer_layer(x, params):
    (g1, b1, wq, bq, wk, bk, wv, bv, wd, bd, g2, b2, win, b_in, wout, b_out) = params

    # --- wrapper-side weight fusion (layout plumbing, plain XLA) ---
    wqkv = jnp.concatenate([wq, wk, wv], axis=1)                     # [H, 3H]
    bqkv = jnp.concatenate([bq, bk, bv], axis=1)                     # [1, 3H]
    wx = _block_diag([win[i][:, :D_HALF] for i in range(NFFN)])      # [H, 64]  (x halves)
    wy = _block_diag([win[i][:, D_HALF:] for i in range(NFFN)])      # [H, 64]  (y halves)
    wxy = jnp.concatenate([wx, wy], axis=1)                          # [H, 128]
    bx = jnp.concatenate([b_in[i][:D_HALF] for i in range(NFFN)])
    by = jnp.concatenate([b_in[i][D_HALF:] for i in range(NFFN)])
    bxy = jnp.concatenate([bx, by])[None, :]                         # [1, 128]
    wo = _block_diag([wout[i] for i in range(NFFN)])                 # [64, H]
    bo = jnp.concatenate([b_out[i] for i in range(NFFN)])[None, :]   # [1, H]
    w_od = wo @ wd                                                   # fold FFN-out + dense
    b_od = bo @ wd + bd                                              # [1, H]

    # --- pack all parameters into two DMA slabs (3 kernel inputs total incl. x) ---
    w_slab = jnp.zeros((W_ROWS, 128), jnp.float32)
    w_slab = w_slab.at[ROW_QKV:ROW_QKV + H, 0:3 * H].set(wqkv)
    w_slab = w_slab.at[ROW_XY:ROW_XY + H, :].set(wxy)
    w_slab = w_slab.at[ROW_OD:ROW_OD + GLU_W, 0:H].set(w_od)

    v_slab = jnp.zeros((8, 128), jnp.float32)
    v_slab = v_slab.at[V_BQKV, 0:3 * H].set(bqkv[0])
    v_slab = v_slab.at[V_BXY, :].set(bxy[0])
    v_slab = v_slab.at[V_BOD, 0:H].set(b_od[0])
    v_slab = v_slab.at[V_G1, 0:H].set(g1[0])
    v_slab = v_slab.at[V_B1, 0:H].set(b1[0])
    v_slab = v_slab.at[V_G2, 0:H].set(g2[0])
    v_slab = v_slab.at[V_B2, 0:H].set(b2[0])

    # [S,B,H] -> [B*S, H] (b-major rows) so attention batches cleanly over B.
    x_bs = jnp.transpose(x, (1, 0, 2)).reshape(BS, H)

    vmem = lambda: pl.BlockSpec(memory_space=pltpu.MemorySpace.VMEM)

    flops = (2 * BS * H * 3 * H                      # fused QKV
             + 2 * 2 * B * NH * S * S * HPH          # scores + probs @ V
             + 2 * BS * H * FFN_IN_W                 # fused FFN-in (x|y)
             + 2 * BS * GLU_W * H)                   # folded FFN-out @ attention_dense
    transcendentals = B * NH * S * S + 2 * BS
    bytes_accessed = 4 * (BS * H                     # x
                          + W_ROWS * 128 + 8 * 128   # weight + vector slabs
                          + BS * H                   # context out
                          + B * NH * S * S)          # scores out

    out2d, scores = pl.pallas_call(
        transformer_layer_kernel,
        out_shape=(
            jax.ShapeDtypeStruct((BS, H), jnp.float32),           # context_layer (flattened)
            jax.ShapeDtypeStruct((B * NH, S, S), jnp.float32),    # matmul_result (bmm layout)
        ),
        in_specs=[vmem(), vmem(), vmem()],
        out_specs=(vmem(), vmem()),
        cost_estimate=pl.CostEstimate(flops=flops,
                                      transcendentals=transcendentals,
                                      bytes_accessed=bytes_accessed),
    )(x_bs, w_slab, v_slab)

    context_layer = jnp.transpose(out2d.reshape(B, S, H), (1, 0, 2))   # [S, B, H]
    matmul_result = scores                                             # [B*NH, S, S]
    return context_layer, matmul_result


# ---- params ----------------------------------------------------------------
def init_params(key):
    ks = jax.random.split(key, 12)
    scale = 0.02
    g1 = jnp.ones((1, H), jnp.float32)
    b1 = jnp.zeros((1, H), jnp.float32)
    g2 = jnp.ones((1, H), jnp.float32)       # norm2 is LayerNorm(hidden_size)
    b2 = jnp.zeros((1, H), jnp.float32)
    wq = scale * jax.random.normal(ks[0], (H, H), jnp.float32)
    bq = scale * jax.random.normal(ks[1], (1, H), jnp.float32)
    wk = scale * jax.random.normal(ks[2], (H, H), jnp.float32)
    bk = scale * jax.random.normal(ks[3], (1, H), jnp.float32)
    wv = scale * jax.random.normal(ks[4], (H, H), jnp.float32)
    bv = scale * jax.random.normal(ks[5], (1, H), jnp.float32)
    wd = scale * jax.random.normal(ks[6], (H, H), jnp.float32)      # attention_dense
    bd = scale * jax.random.normal(ks[7], (1, H), jnp.float32)
    win = scale * jax.random.normal(ks[8], (NFFN, D_IN, D_HID), jnp.float32)
    b_in = scale * jax.random.normal(ks[9], (NFFN, D_HID), jnp.float32)
    wout = scale * jax.random.normal(ks[10], (NFFN, D_HALF, D_IN), jnp.float32)
    b_out = scale * jax.random.normal(ks[11], (NFFN, D_IN), jnp.float32)
    return (g1, b1, wq, bq, wk, bk, wv, bv, wd, bd, g2, b2, win, b_in, wout, b_out)


if __name__ == "__main__":
    key = jax.random.PRNGKey(0)
    k_x, k_p = jax.random.split(key)
    x = jax.random.normal(k_x, (S, B, H), jnp.float32)   # [Seq, Batch, Hidden]
    params = init_params(k_p)

    context_layer, matmul_result = jax.jit(transformer_layer)(x, params)
    jax.block_until_ready((context_layer, matmul_result))

    assert context_layer.shape == (S, B, H)
    assert matmul_result.shape == (B * NH, S, S)
    print("KERNEL_OK")
</pallas_src>

<mosaic_0001>
module attributes {stable_mosaic.version = 11 : i64} {
  func.func @transformer_layer_kernel(%arg0: memref<16x32xf32, #tpu.memory_space<vmem>>, %arg1: memref<128x128xf32, #tpu.memory_space<vmem>>, %arg2: memref<8x128xf32, #tpu.memory_space<vmem>>, %arg3: memref<16x32xf32, #tpu.memory_space<vmem>>, %arg4: memref<8x8x8xf32, #tpu.memory_space<vmem>>) attributes {dimension_semantics = [], scalar_prefetch = 0 : i64, scratch_operands = 0 : i64, tpu.core_type = #tpu.core_type<tc>} {
    %c0 = arith.constant 0 : index
    %c0_0 = arith.constant 0 : index
    %0 = vector.load %arg0[%c0, %c0_0] : memref<16x32xf32, #tpu.memory_space<vmem>>, vector<16x32xf32>
    %c3 = arith.constant 3 : index
    %c0_1 = arith.constant 0 : index
    %1 = vector.load %arg2[%c3, %c0_1] : memref<8x128xf32, #tpu.memory_space<vmem>>, vector<1x32xf32>
    %2 = vector.shape_cast %1 : vector<1x32xf32> to vector<32xf32>
    %c4 = arith.constant 4 : index
    %c0_2 = arith.constant 0 : index
    %3 = vector.load %arg2[%c4, %c0_2] : memref<8x128xf32, #tpu.memory_space<vmem>>, vector<1x32xf32>
    %4 = vector.shape_cast %3 : vector<1x32xf32> to vector<32xf32>
    %cst = arith.constant dense<0.000000e+00> : vector<16xf32>
    %5 = vector.multi_reduction <add>, %0, %cst [1] : vector<16x32xf32> to vector<16xf32>
    %6 = vector.shape_cast %5 : vector<16xf32> to vector<16x1xf32>
    %cst_3 = arith.constant 3.200000e+01 : f32
    %7 = vector.broadcast %cst_3 : f32 to vector<16x1xf32>
    %8 = arith.divf %6, %7 : vector<16x1xf32>
    %9 = vector.broadcast %8 : vector<16x1xf32> to vector<16x32xf32>
    %10 = arith.subf %0, %9 : vector<16x32xf32>
    %11 = arith.mulf %10, %10 : vector<16x32xf32>
    %cst_4 = arith.constant dense<0.000000e+00> : vector<16xf32>
    %12 = vector.multi_reduction <add>, %11, %cst_4 [1] : vector<16x32xf32> to vector<16xf32>
    %13 = vector.shape_cast %12 : vector<16xf32> to vector<16x1xf32>
    %cst_5 = arith.constant 3.200000e+01 : f32
    %14 = vector.broadcast %cst_5 : f32 to vector<16x1xf32>
    %15 = arith.divf %13, %14 : vector<16x1xf32>
    %16 = vector.broadcast %8 : vector<16x1xf32> to vector<16x32xf32>
    %17 = arith.subf %0, %16 : vector<16x32xf32>
    %cst_6 = arith.constant 9.99999996E-13 : f32
    %18 = vector.broadcast %cst_6 : f32 to vector<16x1xf32>
    %19 = arith.addf %15, %18 : vector<16x1xf32>
    %20 = math.rsqrt %19 : vector<16x1xf32>
    %21 = vector.broadcast %20 : vector<16x1xf32> to vector<16x32xf32>
    %22 = arith.mulf %17, %21 : vector<16x32xf32>
    %23 = vector.shape_cast %2 : vector<32xf32> to vector<1x32xf32>
    %24 = vector.broadcast %23 : vector<1x32xf32> to vector<16x32xf32>
    %25 = arith.mulf %22, %24 : vector<16x32xf32>
    %26 = vector.shape_cast %4 : vector<32xf32> to vector<1x32xf32>
    %27 = vector.broadcast %26 : vector<1x32xf32> to vector<16x32xf32>
    %28 = arith.addf %25, %27 : vector<16x32xf32>
    %c0_7 = arith.constant 0 : index
    %c0_8 = arith.constant 0 : index
    %29 = vector.load %arg1[%c0_7, %c0_8] : memref<128x128xf32, #tpu.memory_space<vmem>>, vector<32x96xf32>
    %cst_9 = arith.constant dense<0.000000e+00> : vector<16x96xf32>
    %30 = tpu.matmul %28, %29, %cst_9 {dimension_numbers = #tpu.dot_dimension_numbers<[1], [0], [0], [1], [0, 0, 1, 1], [], []>} : vector<16x32xf32>, vector<32x96xf32>, vector<16x96xf32> -> vector<16x96xf32>
    %c0_10 = arith.constant 0 : index
    %c0_11 = arith.constant 0 : index
    %31 = vector.load %arg2[%c0_10, %c0_11] : memref<8x128xf32, #tpu.memory_space<vmem>>, vector<1x96xf32>
    %32 = vector.shape_cast %31 : vector<1x96xf32> to vector<96xf32>
    %33 = vector.shape_cast %32 : vector<96xf32> to vector<1x96xf32>
    %34 = vector.broadcast %33 : vector<1x96xf32> to vector<16x96xf32>
    %35 = arith.addf %30, %34 : vector<16x96xf32>
    %36 = vector.extract_strided_slice %35 {offsets = [0, 0], sizes = [16, 8], strides = [1, 1]} : vector<16x96xf32> to vector<16x8xf32>
    %37 = vector.shape_cast %36 : vector<16x8xf32> to vector<2x8x8xf32>
    %38 = vector.extract_strided_slice %35 {offsets = [0, 8], sizes = [16, 8], strides = [1, 1]} : vector<16x96xf32> to vector<16x8xf32>
    %39 = vector.shape_cast %38 : vector<16x8xf32> to vector<2x8x8xf32>
    %40 = vector.extract_strided_slice %35 {offsets = [0, 16], sizes = [16, 8], strides = [1, 1]} : vector<16x96xf32> to vector<16x8xf32>
    %41 = vector.shape_cast %40 : vector<16x8xf32> to vector<2x8x8xf32>
    %42 = vector.extract_strided_slice %35 {offsets = [0, 24], sizes = [16, 8], strides = [1, 1]} : vector<16x96xf32> to vector<16x8xf32>
    %43 = vector.shape_cast %42 : vector<16x8xf32> to vector<2x8x8xf32>
    %44 = vector.shape_cast %37 : vector<2x8x8xf32> to vector<2x1x8x8xf32>
    %45 = vector.shape_cast %39 : vector<2x8x8xf32> to vector<2x1x8x8xf32>
    %46 = vector.shape_cast %41 : vector<2x8x8xf32> to vector<2x1x8x8xf32>
    %47 = vector.shape_cast %43 : vector<2x8x8xf32> to vector<2x1x8x8xf32>
    %48 = tpu.concatenate %44, %45, %46, %47 in 1 : vector<2x1x8x8xf32>, vector<2x1x8x8xf32>, vector<2x1x8x8xf32>, vector<2x1x8x8xf32> -> vector<2x4x8x8xf32>
    %49 = vector.shape_cast %48 : vector<2x4x8x8xf32> to vector<8x8x8xf32>
    %50 = vector.extract_strided_slice %35 {offsets = [0, 32], sizes = [16, 8], strides = [1, 1]} : vector<16x96xf32> to vector<16x8xf32>
    %51 = vector.shape_cast %50 : vector<16x8xf32> to vector<2x8x8xf32>
    %52 = vector.extract_strided_slice %35 {offsets = [0, 40], sizes = [16, 8], strides = [1, 1]} : vector<16x96xf32> to vector<16x8xf32>
    %53 = vector.shape_cast %52 : vector<16x8xf32> to vector<2x8x8xf32>
    %54 = vector.extract_strided_slice %35 {offsets = [0, 48], sizes = [16, 8], strides = [1, 1]} : vector<16x96xf32> to vector<16x8xf32>
    %55 = vector.shape_cast %54 : vector<16x8xf32> to vector<2x8x8xf32>
    %56 = vector.extract_strided_slice %35 {offsets = [0, 56], sizes = [16, 8], strides = [1, 1]} : vector<16x96xf32> to vector<16x8xf32>
    %57 = vector.shape_cast %56 : vector<16x8xf32> to vector<2x8x8xf32>
    %58 = vector.shape_cast %51 : vector<2x8x8xf32> to vector<2x1x8x8xf32>
    %59 = vector.shape_cast %53 : vector<2x8x8xf32> to vector<2x1x8x8xf32>
    %60 = vector.shape_cast %55 : vector<2x8x8xf32> to vector<2x1x8x8xf32>
    %61 = vector.shape_cast %57 : vector<2x8x8xf32> to vector<2x1x8x8xf32>
    %62 = tpu.concatenate %58, %59, %60, %61 in 1 : vector<2x1x8x8xf32>, vector<2x1x8x8xf32>, vector<2x1x8x8xf32>, vector<2x1x8x8xf32> -> vector<2x4x8x8xf32>
    %63 = vector.shape_cast %62 : vector<2x4x8x8xf32> to vector<8x8x8xf32>
    %64 = vector.extract_strided_slice %35 {offsets = [0, 64], sizes = [16, 8], strides = [1, 1]} : vector<16x96xf32> to vector<16x8xf32>
    %65 = vector.shape_cast %64 : vector<16x8xf32> to vector<2x8x8xf32>
    %66 = vector.extract_strided_slice %35 {offsets = [0, 72], sizes = [16, 8], strides = [1, 1]} : vector<16x96xf32> to vector<16x8xf32>
    %67 = vector.shape_cast %66 : vector<16x8xf32> to vector<2x8x8xf32>
    %68 = vector.extract_strided_slice %35 {offsets = [0, 80], sizes = [16, 8], strides = [1, 1]} : vector<16x96xf32> to vector<16x8xf32>
    %69 = vector.shape_cast %68 : vector<16x8xf32> to vector<2x8x8xf32>
    %70 = vector.extract_strided_slice %35 {offsets = [0, 88], sizes = [16, 8], strides = [1, 1]} : vector<16x96xf32> to vector<16x8xf32>
    %71 = vector.shape_cast %70 : vector<16x8xf32> to vector<2x8x8xf32>
    %72 = vector.shape_cast %65 : vector<2x8x8xf32> to vector<2x1x8x8xf32>
    %73 = vector.shape_cast %67 : vector<2x8x8xf32> to vector<2x1x8x8xf32>
    %74 = vector.shape_cast %69 : vector<2x8x8xf32> to vector<2x1x8x8xf32>
    %75 = vector.shape_cast %71 : vector<2x8x8xf32> to vector<2x1x8x8xf32>
    %76 = tpu.concatenate %72, %73, %74, %75 in 1 : vector<2x1x8x8xf32>, vector<2x1x8x8xf32>, vector<2x1x8x8xf32>, vector<2x1x8x8xf32> -> vector<2x4x8x8xf32>
    %77 = vector.shape_cast %76 : vector<2x4x8x8xf32> to vector<8x8x8xf32>
    "tpu.trace_start"() <{level = 10 : i32, message = "bqd,bkd->bqk"}> : () -> ()
    %cst_12 = arith.constant dense<0.000000e+00> : vector<8x8x8xf32>
    %78 = tpu.matmul %49, %63, %cst_12 {dimension_numbers = #tpu.dot_dimension_numbers<[2], [2], [1], [1], [0, 0, 0, 1, 1, 1], [0], [0]>} : vector<8x8x8xf32>, vector<8x8x8xf32>, vector<8x8x8xf32> -> vector<8x8x8xf32>
    "tpu.trace_stop"() : () -> ()
    %cst_13 = arith.constant 0.353553385 : f32
    %79 = vector.broadcast %cst_13 : f32 to vector<8x8x8xf32>
    %80 = arith.mulf %78, %79 : vector<8x8x8xf32>
    %c0_14 = arith.constant 0 : index
    %c0_15 = arith.constant 0 : index
    %c0_16 = arith.constant 0 : index
    %81 = vector.load %arg4[%c0_14, %c0_15, %c0_16] : memref<8x8x8xf32, #tpu.memory_space<vmem>>, vector<8x8x8xf32>
    tpu.vector_store %arg4[%c0_14, %c0_15, %c0_16], %80 {strides = array<i32>} : memref<8x8x8xf32, #tpu.memory_space<vmem>>, vector<8x8x8xf32>,
    %cst_17 = arith.constant dense<0xFF800000> : vector<8x8xf32>
    %82 = vector.multi_reduction <maximumf>, %80, %cst_17 [2] : vector<8x8x8xf32> to vector<8x8xf32>
    %83 = vector.shape_cast %82 : vector<8x8xf32> to vector<8x8x1xf32>
    %84 = vector.broadcast %83 : vector<8x8x1xf32> to vector<8x8x8xf32>
    %85 = arith.subf %80, %84 : vector<8x8x8xf32>
    %86 = math.exp %85 : vector<8x8x8xf32>
    %cst_18 = arith.constant dense<0.000000e+00> : vector<8x8xf32>
    %87 = vector.multi_reduction <add>, %86, %cst_18 [2] : vector<8x8x8xf32> to vector<8x8xf32>
    %88 = vector.shape_cast %87 : vector<8x8xf32> to vector<8x8x1xf32>
    %89 = vector.broadcast %88 : vector<8x8x1xf32> to vector<8x8x8xf32>
    %90 = arith.divf %86, %89 : vector<8x8x8xf32>
    "tpu.trace_start"() <{level = 10 : i32, message = "bqk,bkd->bqd"}> : () -> ()
    %cst_19 = arith.constant dense<0.000000e+00> : vector<8x8x8xf32>
    %91 = tpu.matmul %90, %77, %cst_19 {dimension_numbers = #tpu.dot_dimension_numbers<[2], [1], [1], [2], [0, 0, 0, 1, 1, 2], [0], [0]>} : vector<8x8x8xf32>, vector<8x8x8xf32>, vector<8x8x8xf32> -> vector<8x8x8xf32>
    "tpu.trace_stop"() : () -> ()
    %92 = vector.shape_cast %91 : vector<8x8x8xf32> to vector<2x4x8x8xf32>
    %93 = vector.extract_strided_slice %92 {offsets = [0, 0, 0, 0], sizes = [2, 1, 8, 8], strides = [1, 1, 1, 1]} : vector<2x4x8x8xf32> to vector<2x1x8x8xf32>
    %94 = vector.shape_cast %93 : vector<2x1x8x8xf32> to vector<2x8x8xf32>
    %95 = vector.shape_cast %94 : vector<2x8x8xf32> to vector<16x8xf32>
    %96 = vector.extract_strided_slice %92 {offsets = [0, 1, 0, 0], sizes = [2, 1, 8, 8], strides = [1, 1, 1, 1]} : vector<2x4x8x8xf32> to vector<2x1x8x8xf32>
    %97 = vector.shape_cast %96 : vector<2x1x8x8xf32> to vector<2x8x8xf32>
    %98 = vector.shape_cast %97 : vector<2x8x8xf32> to vector<16x8xf32>
    %99 = vector.extract_strided_slice %92 {offsets = [0, 2, 0, 0], sizes = [2, 1, 8, 8], strides = [1, 1, 1, 1]} : vector<2x4x8x8xf32> to vector<2x1x8x8xf32>
    %100 = vector.shape_cast %99 : vector<2x1x8x8xf32> to vector<2x8x8xf32>
    %101 = vector.shape_cast %100 : vector<2x8x8xf32> to vector<16x8xf32>
    %102 = vector.extract_strided_slice %92 {offsets = [0, 3, 0, 0], sizes = [2, 1, 8, 8], strides = [1, 1, 1, 1]} : vector<2x4x8x8xf32> to vector<2x1x8x8xf32>
    %103 = vector.shape_cast %102 : vector<2x1x8x8xf32> to vector<2x8x8xf32>
    %104 = vector.shape_cast %103 : vector<2x8x8xf32> to vector<16x8xf32>
    %105 = tpu.concatenate %95, %98, %101, %104 in 1 : vector<16x8xf32>, vector<16x8xf32>, vector<16x8xf32>, vector<16x8xf32> -> vector<16x32xf32>
    %106 = arith.addf %28, %105 : vector<16x32xf32>
    %c5 = arith.constant 5 : index
    %c0_20 = arith.constant 0 : index
    %107 = vector.load %arg2[%c5, %c0_20] : memref<8x128xf32, #tpu.memory_space<vmem>>, vector<1x32xf32>
    %108 = vector.shape_cast %107 : vector<1x32xf32> to vector<32xf32>
    %c6 = arith.constant 6 : index
    %c0_21 = arith.constant 0 : index
    %109 = vector.load %arg2[%c6, %c0_21] : memref<8x128xf32, #tpu.memory_space<vmem>>, vector<1x32xf32>
    %110 = vector.shape_cast %109 : vector<1x32xf32> to vector<32xf32>
    %cst_22 = arith.constant dense<0.000000e+00> : vector<16xf32>
    %111 = vector.multi_reduction <add>, %106, %cst_22 [1] : vector<16x32xf32> to vector<16xf32>
    %112 = vector.shape_cast %111 : vector<16xf32> to vector<16x1xf32>
    %cst_23 = arith.constant 3.200000e+01 : f32
    %113 = vector.broadcast %cst_23 : f32 to vector<16x1xf32>
    %114 = arith.divf %112, %113 : vector<16x1xf32>
    %115 = vector.broadcast %114 : vector<16x1xf32> to vector<16x32xf32>
    %116 = arith.subf %106, %115 : vector<16x32xf32>
    %117 = arith.mulf %116, %116 : vector<16x32xf32>
    %cst_24 = arith.constant dense<0.000000e+00> : vector<16xf32>
    %118 = vector.multi_reduction <add>, %117, %cst_24 [1] : vector<16x32xf32> to vector<16xf32>
    %119 = vector.shape_cast %118 : vector<16xf32> to vector<16x1xf32>
    %cst_25 = arith.constant 3.200000e+01 : f32
    %120 = vector.broadcast %cst_25 : f32 to vector<16x1xf32>
    %121 = arith.divf %119, %120 : vector<16x1xf32>
    %122 = vector.broadcast %114 : vector<16x1xf32> to vector<16x32xf32>
    %123 = arith.subf %106, %122 : vector<16x32xf32>
    %cst_26 = arith.constant 9.99999996E-13 : f32
    %124 = vector.broadcast %cst_26 : f32 to vector<16x1xf32>
    %125 = arith.addf %121, %124 : vector<16x1xf32>
    %126 = math.rsqrt %125 : vector<16x1xf32>
    %127 = vector.broadcast %126 : vector<16x1xf32> to vector<16x32xf32>
    %128 = arith.mulf %123, %127 : vector<16x32xf32>
    %129 = vector.shape_cast %108 : vector<32xf32> to vector<1x32xf32>
    %130 = vector.broadcast %129 : vector<1x32xf32> to vector<16x32xf32>
    %131 = arith.mulf %128, %130 : vector<16x32xf32>
    %132 = vector.shape_cast %110 : vector<32xf32> to vector<1x32xf32>
    %133 = vector.broadcast %132 : vector<1x32xf32> to vector<16x32xf32>
    %134 = arith.addf %131, %133 : vector<16x32xf32>
    %c32 = arith.constant 32 : index
    %c0_27 = arith.constant 0 : index
    %135 = vector.load %arg1[%c32, %c0_27] : memref<128x128xf32, #tpu.memory_space<vmem>>, vector<32x128xf32>
    %cst_28 = arith.constant dense<0.000000e+00> : vector<16x128xf32>
    %136 = tpu.matmul %134, %135, %cst_28 {dimension_numbers = #tpu.dot_dimension_numbers<[1], [0], [0], [1], [0, 0, 1, 1], [], []>} : vector<16x32xf32>, vector<32x128xf32>, vector<16x128xf32> -> vector<16x128xf32>
    %c1 = arith.constant 1 : index
    %c0_29 = arith.constant 0 : index
    %137 = vector.load %arg2[%c1, %c0_29] : memref<8x128xf32, #tpu.memory_space<vmem>>, vector<1x128xf32>
    %138 = vector.shape_cast %137 : vector<1x128xf32> to vector<128xf32>
    %139 = vector.shape_cast %138 : vector<128xf32> to vector<1x128xf32>
    %140 = vector.broadcast %139 : vector<1x128xf32> to vector<16x128xf32>
    %141 = arith.addf %136, %140 : vector<16x128xf32>
    %142 = vector.extract_strided_slice %141 {offsets = [0, 0], sizes = [16, 64], strides = [1, 1]} : vector<16x128xf32> to vector<16x64xf32>
    %143 = vector.extract_strided_slice %141 {offsets = [0, 64], sizes = [16, 64], strides = [1, 1]} : vector<16x128xf32> to vector<16x64xf32>
    %cst_30 = arith.constant 0.000000e+00 : f32
    %144 = vector.broadcast %cst_30 : f32 to vector<16x64xf32>
    %145 = arith.maximumf %143, %144 : vector<16x64xf32>
    %146 = arith.mulf %142, %145 : vector<16x64xf32>
    %c64 = arith.constant 64 : index
    %c0_31 = arith.constant 0 : index
    %147 = vector.load %arg1[%c64, %c0_31] : memref<128x128xf32, #tpu.memory_space<vmem>>, vector<64x32xf32>
    %cst_32 = arith.constant dense<0.000000e+00> : vector<16x32xf32>
    %148 = tpu.matmul %146, %147, %cst_32 {dimension_numbers = #tpu.dot_dimension_numbers<[1], [0], [0], [1], [0, 0, 1, 1], [], []>} : vector<16x64xf32>, vector<64x32xf32>, vector<16x32xf32> -> vector<16x32xf32>
    %c2 = arith.constant 2 : index
    %c0_33 = arith.constant 0 : index
    %149 = vector.load %arg2[%c2, %c0_33] : memref<8x128xf32, #tpu.memory_space<vmem>>, vector<1x32xf32>
    %150 = vector.shape_cast %149 : vector<1x32xf32> to vector<32xf32>
    %151 = vector.shape_cast %150 : vector<32xf32> to vector<1x32xf32>
    %152 = vector.broadcast %151 : vector<1x32xf32> to vector<16x32xf32>
    %153 = arith.addf %148, %152 : vector<16x32xf32>
    %c0_34 = arith.constant 0 : index
    %c0_35 = arith.constant 0 : index
    %154 = vector.load %arg3[%c0_34, %c0_35] : memref<16x32xf32, #tpu.memory_space<vmem>>, vector<16x32xf32>
    tpu.vector_store %arg3[%c0_34, %c0_35], %153 {strides = array<i32>} : memref<16x32xf32, #tpu.memory_space<vmem>>, vector<16x32xf32>,
    return
  }
}

</mosaic_0001>

<bundles_post_ra>
// kernel: transformer_layer.1
= control target key start
LH: loop header
LB: loop body
LE: loop exit
PB: predicated region body
PF: predicated region fallthrough
CT: control target
= control target key end

     0   :  { %vm21_vm0 = vcmask 261120   ;;  %s2420_s0 = inlined_call_operand.vmem [shape: f32[16,32], index: 0, kind: input, shape index: {}]   ;;  %s2421_s1 = inlined_call_operand.vmem [shape: f32[128,128], index: 1, kind: input, shape index: {}]   ;;  %s2422_s2 = inlined_call_operand.vmem [shape: f32[8,128], index: 2, kind: input, shape index: {}]   ;;  %s2423_s3 = inlined_call_operand.vmem [shape: f32[16,32], index: 3, kind: output, shape index: {0}]   ;;  %s2424_s4 = inlined_call_operand.hbm [shape: f32[8,8,8], index: 4, kind: output, shape index: {1}]  }
   0x1   :  { %v17_v0 = vld [vmem:[%s2420_s0] sm:$0xff]  ;;  %v18_v1 = vld [vmem:[%s2420_s0 + $0x8] sm:$0xff] }
   0x2   :  { %10 = vsyncpa [#allocation3], 0  ;;  %v22_v2 = vsel %vm21_vm0, %v17_v0, 0.0  ;;  %v25_v3 = vsel %vm21_vm0, %v18_v1, 0.0  ;;  %v61_v14 = vld [vmem:[%s2421_s1] sm:$0xff]  ;;  %v62_v15 = vld [vmem:[%s2421_s1 + $0x8] sm:$0xff] }
   0x3   :  { %23 = vadd.xlane.f32.xlu0 %v22_v2  ;;  %v63_v16 = vld [vmem:[%s2421_s1 + $0x10] sm:$0xff]  ;;  %v1991_v17 = vpack.c.bf16 %v62_v15, %v61_v14  ;;  %v64_v18 = vld [vmem:[%s2421_s1 + $0x18] sm:$0xff]  ;;  %v1779_v27 = vld [vmem:[%s2422_s2 + $0x3] ss:$0 sm:$0xff]  ;;  %v2099_v36 = vmov 0.0   ;;  %vm2100_vm1 = vmmov 0  }
   0x4   :  { %v1995_v19 = vpack.c.bf16 %v64_v18, %v63_v16  ;;  %v1780_v29 = vld [vmem:[%s2422_s2 + $0x4] ss:$0 sm:$0xff]  ;;  %1886 = vmatprep.subr.mxu1 %v2099_v36  ;;  %v1781_v37 = vld [vmem:[%s2422_s2] ss:$0 sm:$0xff]  ;;  %1888 = vmatprep.mubr.msk.f32.mxu1 %vm2100_vm1, %v2099_v36  ;;  %s2101_s6 = smov 112   ;;  %s2102_s7 = smov 120  }
   0x5   :  { %1992 = vmatprep.subr.bf16.mxu0 %v1991_v17  ;;  %s2103_s8 = smov 104   ;;  %s2104_s9 = smov 96   ;;  %vm167_vm2 = vcmask 64512   ;;  %vm1512_vm3 = vcmask 130048   ;;  %vm1515_vm4 = vcmask 195584   ;;  %vm1675_vm5 = vcmask 523264  }
   0x6   :  { %1994 = vmatpush3.bf16.msra.mxu0 %v1991_v17  ;;  %s2105_s10 = smov 64   ;;  %s2106_s11 = smov 8  }
   0x7   :  { %26 = vadd.xlane.f32.xlu0 %v25_v3  ;;  %1996 = vmatprep.subr.bf16.mxu0 %v1995_v19  ;;  %s2107_s12 = smov 16   ;;  %s2108_s13 = smov 24  }
   0xa   :  { %1998 = vmatpush3.bf16.msra.mxu0 %v1995_v19 }
   0xb   :  { %1881 = vmatprep.subr.mxu0 %v2099_v36 }
  0x90   :  { %v24_v4 = vpop.xlane.xlu0 %23 }
  0x91   :  { %v29_v5 = vmul.f32 0.03125, %v24_v4 }
  0x93   :  { %v31_v6 = vsub.f32 %v17_v0, %v29_v5 }
  0x94   :  { %v27_v7 = vpop.xlane.xlu0 %26 }
  0x95   :  { %v30_v8 = vmul.f32 0.03125, %v27_v7  ;;  %v33_v9 = vmul.f32 %v31_v6, %v31_v6 }
  0x97   :  { %v32_v10 = vsub.f32 %v18_v1, %v30_v8  ;;  %v35_v11 = vsel %vm21_vm0, %v33_v9, 0.0 }
  0x98   :  { %36 = vadd.xlane.f32.xlu1 %v35_v11 }
  0x99   :  { %v34_v12 = vmul.f32 %v32_v10, %v32_v10 }
  0x9b   :  { %v38_v13 = vsel %vm21_vm0, %v34_v12, 0.0 }
  0x9c   :  { %39 = vadd.xlane.f32.xlu1 %v38_v13 }
 0x125   :  { %v37_v20 = vpop.xlane.xlu1 %36 }
 0x126   :  { %v41_v21 = vmul.f32 0.03125, %v37_v20 }
 0x128   :  { %v43_v22 = vadd.f32 1e-12, %v41_v21 }
 0x129   :  { %v40_v23 = vpop.xlane.xlu1 %39 }
 0x12a   :  { %2035 = vrsqrt.f32 %v43_v22  ;;  %v42_v24 = vmul.f32 0.03125, %v40_v23 }
 0x12c   :  { %v44_v25 = vadd.f32 1e-12, %v42_v24 }
 0x12e   :  { %2037 = vrsqrt.f32 %v44_v25 }
 0x134   :  { %v2036_v26 = vpop.eup %2035 }
 0x135   :  { %v47_v28 = vmul.f32 %v2036_v26, %v31_v6 }
 0x137   :  { %v53_v30 = vmul.f32 %v1779_v27, %v47_v28 }
 0x138   :  { %v2038_v31 = vpop.eup %2037 }
 0x139   :  { %v48_v32 = vmul.f32 %v2038_v31, %v32_v10  ;;  %v2164_v33 = vadd.f32 %v1780_v29, %v53_v30 }
 0x13b   :  { %v54_v34 = vmul.f32 %v1779_v27, %v48_v32  ;;  %1878 = vmatprep.mubr.msk.f32.mxu0 %vm21_vm0, %v2164_v33 }
 0x13d   :  { %v2168_v35 = vadd.f32 %v1780_v29, %v54_v34 }
 0x13f   :  { %1879 = vmatmul.mubr.msk.f32.vlgmr.msra.gmra.mrb[0].mxu0 %vm21_vm0, %v2168_v35 }
 0x140   :  { %1883 = vmatprep.mubr.msk.f32.mxu0 %vm2100_vm1, %v2099_v36 }
 0x212   :  { %v1880_v38 = vpop.f32.mrb[0].mxu0 }
 0x213   :  { %v142_v39 = vpop.f32.mrb[1].mxu0  ;;  %v2185_v41 = vadd.f32 %v1880_v38, %v1781_v37 }
 0x214   :  { %v2181_v40 = vadd.f32 %v1781_v37, %v142_v39 }
 0x216   :  { %157 = vrot.lane.b32.xlu1 %v2181_v40, %s2101_s6  ;;  %153 = vrot.lane.b32.xlu0 %v2181_v40, %s2102_s7 }
 0x21a   :  { %161 = vrot.lane.b32.xlu1 %v2181_v40, %s2103_s8  ;;  %159 = vrot.lane.b32.xlu0 %v2185_v41, %s2101_s6 }
 0x21e   :  { %155 = vrot.lane.b32.xlu1 %v2185_v41, %s2102_s7  ;;  %165 = vrot.lane.b32.xlu0 %v2181_v40, %s2104_s9 }
 0x222   :  { %163 = vrot.lane.b32.xlu1 %v2185_v41, %s2103_s8 }
 0x288   :  { %v2192_v42 = vpop.permute.xlu1 %157  ;;  %v2194_v43 = vpop.permute.xlu0 %153 }
 0x289   :  { %318 = vrot.lane.b32.xlu0 %v2192_v42, %s2104_s9  ;;  %242 = vrot.lane.b32.xlu1 %v2194_v43, %s2104_s9 }
 0x28c   :  { %v2198_v44 = vpop.permute.xlu1 %161  ;;  %v2200_v45 = vpop.permute.xlu0 %159 }
 0x28d   :  { %470 = vrot.lane.b32.xlu0 %v2185_v41, %s2104_s9  ;;  %394 = vrot.lane.b32.xlu1 %v2198_v44, %s2104_s9 }
 0x290   :  { %v2204_v46 = vpop.permute.xlu1 %155  ;;  %v166_v47 = vpop.permute.xlu0 %165 }
 0x291   :  { %546 = vrot.lane.b32.xlu1 %v2204_v46, %s2104_s9  ;;  %622 = vrot.lane.b32.xlu0 %v2200_v45, %s2104_s9 }
 0x292   :  { %1882 = vmatpush3.xpose.msk.msra.mxu0 %vm167_vm2, %v166_v47 }
 0x293   :  { %1891 = vmatprep.subr.mxu0 %v2099_v36 }
 0x294   :  { %v2210_v48 = vpop.permute.xlu1 %163 }
 0x295   :  { %1884 = vmatmul.mubr.msk.f32.vlgmr.msra.gmra.mrb[2].mxu0 %vm167_vm2, %v2181_v40  ;;  %698 = vrot.lane.b32.xlu1 %v2210_v48, %s2104_s9 }
 0x296   :  { %1893 = vmatprep.mubr.msk.f32.mxu0 %vm2100_vm1, %v2099_v36 }
 0x2fb   :  { %v243_v49 = vpop.permute.xlu1 %242  ;;  %v319_v50 = vpop.permute.xlu0 %318 }
 0x2fc   :  { %1887 = vmatpush3.xpose.msk.msra.mxu1 %vm167_vm2, %v243_v49  ;;  %1892 = vmatpush3.xpose.msk.msra.mxu0 %vm167_vm2, %v319_v50 }
 0x2fd   :  { %1896 = vmatprep.subr.mxu1 %v2099_v36  ;;  %1901 = vmatprep.subr.mxu0 %v2099_v36 }
 0x2ff   :  { %1889 = vmatmul.mubr.msk.f32.vlgmr.msra.gmra.mrb[0].mxu1 %vm167_vm2, %v2194_v43  ;;  %v395_v51 = vpop.permute.xlu1 %394  ;;  %1894 = vmatmul.mubr.msk.f32.vlgmr.msra.gmra.mrb[4].mxu0 %vm167_vm2, %v2192_v42  ;;  %v471_v52 = vpop.permute.xlu0 %470 }
 0x300   :  { %1897 = vmatpush3.xpose.msk.msra.mxu1 %vm167_vm2, %v395_v51  ;;  %1902 = vmatpush3.xpose.msk.msra.mxu0 %vm167_vm2, %v471_v52 }
 0x301   :  { %1898 = vmatprep.mubr.msk.f32.mxu1 %vm2100_vm1, %v2099_v36  ;;  %1903 = vmatprep.mubr.msk.f32.mxu0 %vm2100_vm1, %v2099_v36 }
 0x302   :  { %1906 = vmatprep.subr.mxu1 %v2099_v36  ;;  %1911 = vmatprep.subr.mxu0 %v2099_v36 }
 0x303   :  { %1899 = vmatmul.mubr.msk.f32.vlgmr.msra.gmra.mrb[2].mxu1 %vm167_vm2, %v2198_v44  ;;  %v547_v53 = vpop.permute.xlu1 %546  ;;  %1904 = vmatmul.mubr.msk.f32.vlgmr.msra.gmra.mrb[6].mxu0 %vm167_vm2, %v2185_v41  ;;  %v623_v54 = vpop.permute.xlu0 %622 }
 0x304   :  { %1907 = vmatpush3.xpose.msk.msra.mxu1 %vm167_vm2, %v547_v53  ;;  %1912 = vmatpush3.xpose.msk.msra.mxu0 %vm167_vm2, %v623_v54 }
 0x305   :  { %1908 = vmatprep.mubr.msk.f32.mxu1 %vm2100_vm1, %v2099_v36  ;;  %1913 = vmatprep.mubr.msk.f32.mxu0 %vm2100_vm1, %v2099_v36 }
 0x306   :  { %1916 = vmatprep.subr.mxu1 %v2099_v36  ;;  %1921 = vmatprep.subr.mxu0 %v2099_v36 }
 0x307   :  { %1909 = vmatmul.mubr.msk.f32.vlgmr.msra.gmra.mrb[4].mxu1 %vm167_vm2, %v2204_v46  ;;  %v699_v55 = vpop.permute.xlu1 %698  ;;  %1914 = vmatmul.mubr.msk.f32.vlgmr.msra.gmra.mrb[8].mxu0 %vm167_vm2, %v2200_v45 }
 0x308   :  { %1917 = vmatpush3.xpose.msk.msra.mxu1 %vm167_vm2, %v699_v55  ;;  %1918 = vmatprep.mubr.msk.f32.mxu1 %vm2100_vm1, %v2099_v36 }
 0x309   :  { %1926 = vmatprep.subr.mxu1 %v2099_v36  ;;  %1923 = vmatprep.mubr.msk.f32.mxu0 %vm2100_vm1, %v2099_v36 }
 0x30b   :  { %1919 = vmatmul.mubr.msk.f32.vlgmr.msra.gmra.mrb[6].mxu1 %vm167_vm2, %v2210_v48 }
 0x30c   :  { %1928 = vmatprep.mubr.msk.f32.mxu1 %vm2100_vm1, %v2099_v36 }
 0x368   :  { %v238_v56 = vpop.f32.mrb[2].mxu0 }
 0x369   :  { %v774_v57 = vmul.f32 0.35355338, %v238_v56  ;;  %v1885_v58 = vpop.f32.mrb[3].mxu0 }
 0x36b   :  { %782 = vst.msk [vmem:[#allocation2] sm:$0xff] %vm167_vm2, %v774_v57  ;;  %v790_v59 = vsel %vm167_vm2, %v774_v57, -inf }
 0x36c   :  { %791 = vmax.xlane.f32.xlu0 %v790_v59 }
 0x3d2   :  { %v314_v60 = vpop.f32.mrb[0].mxu1  ;;  %v390_v61 = vpop.f32.mrb[4].mxu0 }
 0x3d3   :  { %v775_v62 = vmul.f32 0.35355338, %v314_v60  ;;  %v776_v63 = vmul.f32 0.35355338, %v390_v61  ;;  %v1890_v0 = vpop.f32.mrb[1].mxu1  ;;  %v1895_v1 = vpop.f32.mrb[5].mxu0 }
 0x3d5   :  { %783 = vst.msk [vmem:[#allocation2 + $0x8] sm:$0xff] %vm167_vm2, %v775_v62  ;;  %784 = vst.msk [vmem:[#allocation2 + $0x10] sm:$0xff] %vm167_vm2, %v776_v63  ;;  %v793_v2 = vsel %vm167_vm2, %v775_v62, -inf  ;;  %v796_v3 = vsel %vm167_vm2, %v776_v63, -inf }
 0x3d6   :  { %794 = vmax.xlane.f32.xlu1 %v793_v2  ;;  %v466_v4 = vpop.f32.mrb[2].mxu1  ;;  %797 = vmax.xlane.f32.xlu0 %v796_v3  ;;  %v542_v5 = vpop.f32.mrb[6].mxu0 }
 0x3d7   :  { %v777_v6 = vmul.f32 0.35355338, %v466_v4  ;;  %v778_v7 = vmul.f32 0.35355338, %v542_v5  ;;  %v1900_v8 = vpop.f32.mrb[3].mxu1  ;;  %v1905_v9 = vpop.f32.mrb[7].mxu0 }
 0x3d9   :  { %785 = vst.msk [vmem:[#allocation2 + $0x18] sm:$0xff] %vm167_vm2, %v777_v6  ;;  %786 = vst.msk [vmem:[#allocation2 + $0x20] sm:$0xff] %vm167_vm2, %v778_v7  ;;  %v799_v10 = vsel %vm167_vm2, %v777_v6, -inf  ;;  %v802_v18 = vsel %vm167_vm2, %v778_v7, -inf }
 0x3da   :  { %v618_v11 = vpop.f32.mrb[4].mxu1  ;;  %800 = vmax.xlane.f32.xlu0 %v799_v10  ;;  %v694_v12 = vpop.f32.mrb[8].mxu0 }
 0x3db   :  { %v779_v13 = vmul.f32 0.35355338, %v618_v11  ;;  %v780_v14 = vmul.f32 0.35355338, %v694_v12  ;;  %v1910_v15 = vpop.f32.mrb[5].mxu1  ;;  %v1915_v16 = vpop.f32.mrb[9].mxu0 }
 0x3dd   :  { %787 = vst.msk [vmem:[#allocation2 + $0x28] sm:$0xff] %vm167_vm2, %v779_v13  ;;  %788 = vst.msk [vmem:[#allocation2 + $0x30] sm:$0xff] %vm167_vm2, %v780_v14  ;;  %v805_v17 = vsel %vm167_vm2, %v779_v13, -inf  ;;  %v808_v23 = vsel %vm167_vm2, %v780_v14, -inf }
 0x3de   :  { %806 = vmax.xlane.f32.xlu1 %v805_v17  ;;  %v770_v19 = vpop.f32.mrb[6].mxu1  ;;  %803 = vmax.xlane.f32.xlu0 %v802_v18 }
 0x3df   :  { %v781_v20 = vmul.f32 0.35355338, %v770_v19  ;;  %v1920_v21 = vpop.f32.mrb[7].mxu1 }
 0x3e1   :  { %789 = vst.msk [vmem:[#allocation2 + $0x38] sm:$0xff] %vm167_vm2, %v781_v20  ;;  %v811_v22 = vsel %vm167_vm2, %v781_v20, -inf }
 0x3e2   :  { %812 = vmax.xlane.f32.xlu1 %v811_v22  ;;  %809 = vmax.xlane.f32.xlu0 %v808_v23 }
 0x3f3   :  { %954 = vrot.lane.b32.xlu1 %v2194_v43, %s2105_s10 }
 0x3f7   :  { %1030 = vrot.lane.b32.xlu1 %v2192_v42, %s2105_s10 }
 0x3f8   :  { %878 = vrot.lane.b32.xlu0 %v2181_v40, %s2105_s10 }
 0x3f9   :  { %v792_v24 = vpop.xlane.xlu0 %791 }
 0x3fa   :  { %v814_v25 = vsub.f32 %v774_v57, %v792_v24 }
 0x3fb   :  { %1106 = vrot.lane.b32.xlu1 %v2198_v44, %s2105_s10 }
 0x3fc   :  { %1182 = vrot.lane.b32.xlu0 %v2185_v41, %s2105_s10  ;;  %v822_v26 = vmul.f32 1.442695, %v814_v25 }
 0x3fe   :  { %2039 = vpow2.f32 %v822_v26 }
 0x3ff   :  { %1258 = vrot.lane.b32.xlu1 %v2204_v46, %s2105_s10 }
 0x408   :  { %v2287_v27 = vpop.eup %2039 }
 0x409   :  { %v838_v28 = vsel %vm167_vm2, %v2287_v27, 0.0 }
 0x41b   :  { %839 = vadd.xlane.f32.xlu0 %v838_v28 }
 0x463   :  { %v795_v29 = vpop.xlane.xlu1 %794  ;;  %v798_v30 = vpop.xlane.xlu0 %797 }
 0x464   :  { %v815_v31 = vsub.f32 %v775_v62, %v795_v29  ;;  %v816_v32 = vsub.f32 %v776_v63, %v798_v30 }
 0x466   :  { %v824_v34 = vmul.f32 1.442695, %v815_v31  ;;  %v826_v37 = vmul.f32 1.442695, %v816_v32 }
 0x467   :  { %v801_v38 = vpop.xlane.xlu0 %800 }
 0x468   :  { %2041 = vpow2.f32 %v824_v34  ;;  %v817_v39 = vsub.f32 %v777_v6, %v801_v38 }
 0x469   :  { %2043 = vpow2.f32 %v826_v37 }
 0x46a   :  { %v828_v40 = vmul.f32 1.442695, %v817_v39 }
 0x46b   :  { %v807_v41 = vpop.xlane.xlu1 %806  ;;  %v804_v42 = vpop.xlane.xlu0 %803 }
 0x46c   :  { %2045 = vpow2.f32 %v828_v40  ;;  %v819_v43 = vsub.f32 %v779_v13, %v807_v41  ;;  %v818_v44 = vsub.f32 %v778_v7, %v804_v42 }
 0x46e   :  { %v832_v46 = vmul.f32 1.442695, %v819_v43  ;;  %v830_v47 = vmul.f32 1.442695, %v818_v44 }
 0x46f   :  { %v813_v49 = vpop.xlane.xlu1 %812  ;;  %v810_v50 = vpop.xlane.xlu0 %809 }
 0x470   :  { %2047 = vpow2.f32 %v832_v46  ;;  %v821_v51 = vsub.f32 %v781_v20, %v813_v49  ;;  %v820_v52 = vsub.f32 %v780_v14, %v810_v50 }
 0x471   :  { %2049 = vpow2.f32 %v830_v47 }
 0x472   :  { %v2042_v53 = vpop.eup %2041  ;;  %v836_v54 = vmul.f32 1.442695, %v821_v51  ;;  %v834_v55 = vmul.f32 1.442695, %v820_v52 }
 0x473   :  { %v2044_v56 = vpop.eup %2043  ;;  %v955_v57 = vpop.permute.xlu1 %954  ;;  %v841_v59 = vsel %vm167_vm2, %v2042_v53, 0.0 }
 0x474   :  { %v879_v58 = vpop.permute.xlu0 %878  ;;  %2051 = vpow2.f32 %v836_v54  ;;  %842 = vadd.xlane.f32.xlu1 %v841_v59  ;;  %1927 = vmatpush3.msra.mxu1 %v955_v57  ;;  %v844_v60 = vsel %vm167_vm2, %v2044_v56, 0.0 }
 0x475   :  { %2053 = vpow2.f32 %v834_v55  ;;  %845 = vadd.xlane.f32.xlu0 %v844_v60  ;;  %1922 = vmatpush3.msra.mxu0 %v879_v58 }
 0x476   :  { %v2046_v61 = vpop.eup %2045  ;;  %1931 = vmatprep.subr.mxu0 %v2099_v36  ;;  %1936 = vmatprep.subr.mxu1 %v2099_v36 }
 0x477   :  { %v847_v62 = vsel %vm167_vm2, %v2046_v61, 0.0  ;;  %v1031_v11 = vpop.permute.xlu1 %1030 }
 0x478   :  { %848 = vadd.xlane.f32.xlu1 %v847_v62  ;;  %v1183_v7 = vpop.permute.xlu0 %1182 }
 0x47a   :  { %v2048_v63 = vpop.eup %2047 }
 0x47b   :  { %v2050_v0 = vpop.eup %2049  ;;  %v853_v1 = vsel %vm167_vm2, %v2048_v63, 0.0  ;;  %v1107_v12 = vpop.permute.xlu1 %1106 }
 0x47c   :  { %854 = vadd.xlane.f32.xlu1 %v853_v1  ;;  %v850_v2 = vsel %vm167_vm2, %v2050_v0, 0.0 }
 0x47d   :  { %851 = vadd.xlane.f32.xlu0 %v850_v2 }
 0x47e   :  { %v2298_v3 = vpop.eup %2051 }
 0x47f   :  { %v2300_v4 = vpop.eup %2053  ;;  %v859_v5 = vsel %vm167_vm2, %v2298_v3, 0.0 }
 0x480   :  { %860 = vadd.xlane.f32.xlu1 %v859_v5  ;;  %v856_v6 = vsel %vm167_vm2, %v2300_v4, 0.0 }
 0x481   :  { %857 = vadd.xlane.f32.xlu0 %v856_v6 }
 0x491   :  { %1410 = vrot.lane.b32.xlu1 %v2210_v48, %s2105_s10  ;;  %v1259_v48 = vpop.permute.xlu1 %1258 }
 0x497   :  { %1334 = vrot.lane.b32.xlu0 %v2200_v45, %s2105_s10 }
 0x4a8   :  { %v840_v8 = vpop.xlane.xlu0 %839 }
 0x4a9   :  { %2055 = vrcp.f32 %v840_v8 }
 0x4b3   :  { %v2056_v9 = vpop.eup %2055 }
 0x4b4   :  { %v863_v10 = vmul.f32 %v2056_v9, %v2287_v27 }
 0x4b6   :  { %1924 = vmatmul.mubr.msk.f32.vlgmr.msra.gmra.mrb[10].mxu0 %vm167_vm2, %v863_v10 }
 0x4b7   :  { %1932 = vmatpush3.msra.mxu0 %v1031_v11  ;;  %1933 = vmatprep.mubr.msk.f32.mxu0 %vm2100_vm1, %v2099_v36 }
 0x4b8   :  { %1941 = vmatprep.subr.mxu0 %v2099_v36 }
 0x501   :  { %v843_v13 = vpop.xlane.xlu1 %842 }
 0x502   :  { %2057 = vrcp.f32 %v843_v13  ;;  %v846_v45 = vpop.xlane.xlu0 %845 }
 0x503   :  { %2059 = vrcp.f32 %v846_v45 }
 0x505   :  { %v849_v14 = vpop.xlane.xlu1 %848 }
 0x506   :  { %2061 = vrcp.f32 %v849_v14  ;;  %v1561_v14 = vld [vmem:[%s2421_s1 + $0x28] sm:$0xff] }
 0x509   :  { %v855_v15 = vpop.xlane.xlu1 %854 }
 0x50a   :  { %2063 = vrcp.f32 %v855_v15  ;;  %v852_v16 = vpop.xlane.xlu0 %851 }
 0x50b   :  { %2065 = vrcp.f32 %v852_v16  ;;  %v1562_v16 = vld [vmem:[%s2421_s1 + $0x30] sm:$0xff] }
 0x50c   :  { %v2058_v17 = vpop.eup %2057 }
 0x50d   :  { %v2060_v18 = vpop.eup %2059  ;;  %v865_v19 = vmul.f32 %v2058_v17, %v2042_v53  ;;  %v861_v20 = vpop.xlane.xlu1 %860  ;;  %v1563_v17 = vld [vmem:[%s2421_s1 + $0x38] sm:$0xff] }
 0x50e   :  { %v867_v21 = vmul.f32 %v2060_v18, %v2044_v56  ;;  %2067 = vrcp.f32 %v861_v20  ;;  %v858_v22 = vpop.xlane.xlu0 %857  ;;  %v2003_v18 = vpack.c.bf16 %v1563_v17, %v1562_v16 }
 0x50f   :  { %2069 = vrcp.f32 %v858_v22  ;;  %1929 = vmatmul.mubr.msk.f32.vlgmr.msra.gmra.mrb[8].mxu1 %vm167_vm2, %v865_v19 }
 0x510   :  { %v2062_v23 = vpop.eup %2061  ;;  %1934 = vmatmul.mubr.msk.f32.vlgmr.msra.gmra.mrb[12].mxu0 %vm167_vm2, %v867_v21  ;;  %1937 = vmatpush3.msra.mxu1 %v1107_v12 }
 0x511   :  { %v869_v24 = vmul.f32 %v2062_v23, %v2046_v61  ;;  %1942 = vmatpush3.msra.mxu0 %v1183_v7  ;;  %1938 = vmatprep.mubr.msk.f32.mxu1 %vm2100_vm1, %v2099_v36  ;;  %v1411_v29 = vpop.permute.xlu1 %1410 }
 0x512   :  { %1946 = vmatprep.subr.mxu1 %v2099_v36  ;;  %1943 = vmatprep.mubr.msk.f32.mxu0 %vm2100_vm1, %v2099_v36  ;;  %v1335_v31 = vpop.permute.xlu0 %1334 }
 0x513   :  { %1939 = vmatmul.mubr.msk.f32.vlgmr.msra.gmra.mrb[10].mxu1 %vm167_vm2, %v869_v24  ;;  %1951 = vmatprep.subr.mxu0 %v2099_v36 }
 0x514   :  { %v2064_v25 = vpop.eup %2063  ;;  %1947 = vmatpush3.msra.mxu1 %v1259_v48  ;;  %1948 = vmatprep.mubr.msk.f32.mxu1 %vm2100_vm1, %v2099_v36 }
 0x515   :  { %v2066_v26 = vpop.eup %2065  ;;  %v873_v27 = vmul.f32 %v2064_v25, %v2048_v63  ;;  %1956 = vmatprep.subr.mxu1 %v2099_v36 }
 0x516   :  { %v871_v28 = vmul.f32 %v2066_v26, %v2050_v0  ;;  %v1808_v26 = vld [vmem:[%s2422_s2 + $0x5] ss:$0 sm:$0xff] }
 0x517   :  { %1949 = vmatmul.mubr.msk.f32.vlgmr.msra.gmra.mrb[12].mxu1 %vm167_vm2, %v873_v27 }
 0x518   :  { %v2068_v30 = vpop.eup %2067  ;;  %1944 = vmatmul.mubr.msk.f32.vlgmr.msra.gmra.mrb[14].mxu0 %vm167_vm2, %v871_v28  ;;  %1957 = vmatpush3.msra.mxu1 %v1411_v29  ;;  %v1809_v28 = vld [vmem:[%s2422_s2 + $0x6] ss:$0 sm:$0xff] }
 0x519   :  { %v2070_v32 = vpop.eup %2069  ;;  %v877_v34 = vmul.f32 %v2068_v30, %v2298_v3  ;;  %1952 = vmatpush3.msra.mxu0 %v1335_v31  ;;  %1953 = vmatprep.mubr.msk.f32.mxu0 %vm2100_vm1, %v2099_v36 }
 0x51a   :  { %v875_v37 = vmul.f32 %v2070_v32, %v2300_v4  ;;  %1958 = vmatprep.mubr.msk.f32.mxu1 %vm2100_vm1, %v2099_v36 }
 0x51b   :  { %1959 = vmatmul.mubr.msk.f32.vlgmr.msra.gmra.mrb[14].mxu1 %vm167_vm2, %v877_v34 }
 0x51c   :  { %1954 = vmatmul.mubr.msk.f32.vlgmr.msra.gmra.mrb[16].mxu0 %vm167_vm2, %v875_v37 }
 0x589   :  { %v950_v38 = vpop.f32.mrb[10].mxu0 }
 0x58a   :  { %v1925_v39 = vpop.f32.mrb[11].mxu0 }
 0x58b   :  { %v1663_v39 = vld [vmem:[%s2421_s1 + $0x48] sm:$0xff] }
 0x5e2   :  { %v1026_v40 = vpop.f32.mrb[8].mxu1 }
 0x5e3   :  { %v1102_v41 = vpop.f32.mrb[12].mxu0  ;;  %v1930_v42 = vpop.f32.mrb[9].mxu1  ;;  %1488 = vrot.lane.b32.xlu0 %v1026_v40, %s2106_s11  ;;  %v1664_v40 = vld [vmem:[%s2421_s1 + $0x50] sm:$0xff] }
 0x5e4   :  { %v1935_v43 = vpop.f32.mrb[13].mxu0  ;;  %v1665_v42 = vld [vmem:[%s2421_s1 + $0x58] sm:$0xff] }
 0x5e5   :  { %v2011_v43 = vpack.c.bf16 %v1665_v42, %v1664_v40 }
 0x5e6   :  { %v1178_v44 = vpop.f32.mrb[10].mxu1 }
 0x5e7   :  { %v1940_v46 = vpop.f32.mrb[11].mxu1  ;;  %1496 = vrot.lane.b32.xlu0 %v1102_v41, %s2107_s12 }
 0x5e8   :  { %v1667_v46 = vld [vmem:[%s2421_s1 + $0x68] sm:$0xff] }
 0x5ea   :  { %v1330_v47 = vpop.f32.mrb[12].mxu1 }
 0x5eb   :  { %v1254_v49 = vpop.f32.mrb[14].mxu0  ;;  %1490 = vrot.lane.b32.xlu1 %v1330_v47, %s2106_s11  ;;  %v1950_v36 = vpop.f32.mrb[13].mxu1  ;;  %1504 = vrot.lane.b32.xlu0 %v1178_v44, %s2108_s13  ;;  %v1666_v44 = vld [vmem:[%s2421_s1 + $0x60] sm:$0xff] }
 0x5ec   :  { %v1945_v50 = vpop.f32.mrb[15].mxu0  ;;  %v2015_v47 = vpack.c.bf16 %v1667_v46, %v1666_v44  ;;  %v1669_v36 = vld [vmem:[%s2421_s1 + $0x78] sm:$0xff] }
 0x5ee   :  { %v1482_v51 = vpop.f32.mrb[14].mxu1 }
 0x5ef   :  { %v1406_v52 = vpop.f32.mrb[16].mxu0  ;;  %v1960_v53 = vpop.f32.mrb[15].mxu1 }
 0x5f0   :  { %1498 = vrot.lane.b32.xlu1 %v1406_v52, %s2107_s12  ;;  %v1955_v54 = vpop.f32.mrb[17].mxu0 }
 0x5f4   :  { %1506 = vrot.lane.b32.xlu1 %v1482_v51, %s2108_s13  ;;  %v1810_v51 = vld [vmem:[%s2422_s2 + $0x1] ss:$0 sm:$0xff] }
 0x655   :  { %v1489_v55 = vpop.permute.xlu0 %1488 }
 0x656   :  { %v1510_v57 = vsel %vm167_vm2, %v950_v38, %v1489_v55  ;;  %v1662_v38 = vld [vmem:[%s2421_s1 + $0x40] sm:$0xff] }
 0x657   :  { %v2007_v41 = vpack.c.bf16 %v1663_v39, %v1662_v38 }
 0x659   :  { %v1497_v56 = vpop.permute.xlu0 %1496  ;;  %2008 = vmatprep.subr.bf16.mxu1 %v2007_v41 }
 0x65a   :  { %v1513_v58 = vsel %vm1512_vm3, %v1510_v57, %v1497_v56  ;;  %2010 = vmatpush3.bf16.msra.mxu1 %v2007_v41 }
 0x65b   :  { %2012 = vmatprep.subr.bf16.mxu1 %v2011_v43 }
 0x65d   :  { %v1491_v59 = vpop.permute.xlu1 %1490  ;;  %v1505_v60 = vpop.permute.xlu0 %1504 }
 0x65e   :  { %v1516_v61 = vsel %vm1515_vm4, %v1513_v58, %v1505_v60  ;;  %v1511_v1 = vsel %vm167_vm2, %v1254_v49, %v1491_v59  ;;  %2014 = vmatpush3.bf16.msra.mxu1 %v2011_v43  ;;  %v1668_v49 = vld [vmem:[%s2421_s1 + $0x70] sm:$0xff] }
 0x65f   :  { %v1518_v62 = vadd.f32 %v1516_v61, %v2164_v33  ;;  %2016 = vmatprep.subr.bf16.mxu1 %v2015_v47  ;;  %v2019_v50 = vpack.c.bf16 %v1669_v36, %v1668_v49 }
 0x661   :  { %v1522_v63 = vsel %vm21_vm0, %v1518_v62, 0.0 }
 0x662   :  { %v1499_v0 = vpop.permute.xlu1 %1498  ;;  %1523 = vadd.xlane.f32.xlu0 %v1522_v63  ;;  %2018 = vmatpush3.bf16.msra.mxu1 %v2015_v47 }
 0x663   :  { %v1514_v2 = vsel %vm1512_vm3, %v1511_v1, %v1499_v0  ;;  %2020 = vmatprep.subr.bf16.mxu1 %v2019_v50 }
 0x666   :  { %v1507_v3 = vpop.permute.xlu1 %1506  ;;  %2022 = vmatpush3.bf16.msra.mxu1 %v2019_v50 }
 0x667   :  { %v1517_v4 = vsel %vm1515_vm4, %v1514_v2, %v1507_v3 }
 0x668   :  { %v1519_v5 = vadd.f32 %v1517_v4, %v2168_v35  ;;  %v1560_v35 = vld [vmem:[%s2421_s1 + $0x20] sm:$0xff]  ;;  %s2109_s1 = smov [#allocation2]  }
 0x669   :  { %v1999_v15 = vpack.c.bf16 %v1561_v14, %v1560_v35  ;;  %s1766_s0 = sshll.u32 %s2109_s1, 4  ;;  %s1767_s0 = int_to_ptr.vmem [resolvable:$true] %s1766_s0 }
 0x66a   :  { %v1525_v6 = vsel %vm21_vm0, %v1519_v5, 0.0  ;;  %s2075_s19 = scalar_lea.vmem %s1767_s0, 1024  ;;  %p2080_p1 = scmp.lt.s32.totalorder %s1767_s0, %s1767_s0 }
 0x66b   :  { %1526 = vadd.xlane.f32.xlu1 %v1525_v6  ;;  %2000 = vmatprep.subr.bf16.mxu0 %v1999_v15  ;;  %p2076_p0 = scmp.ne.s32.totalorder %s1767_s0, %s2075_s19  ;;  %p2081_p2 = scmp.lt.s32.totalorder %s2075_s19, %s2075_s19 }
 0x66c   :  { %2002 = vmatpush3.bf16.msra.mxu0 %v1999_v15 }
 0x66d   :  { %2004 = vmatprep.subr.bf16.mxu0 %v2003_v18  ;;  %p2082_p3 = por %p2081_p2, %p2080_p1 }
 0x66f   :  { %p2083_p4 = pnand %p2082_p3, %p2076_p0 }
 0x670   :  { %2006 = vmatpush3.bf16.msra.mxu0 %v2003_v18 }
 0x6ef   :  { %v1524_v7 = vpop.xlane.xlu0 %1523 }
 0x6f0   :  { %v1528_v8 = vmul.f32 0.03125, %v1524_v7 }
 0x6f2   :  { %v1530_v9 = vsub.f32 %v1518_v62, %v1528_v8 }
 0x6f4   :  { %v1532_v10 = vmul.f32 %v1530_v9, %v1530_v9 }
 0x6f6   :  { %v1534_v33 = vsel %vm21_vm0, %v1532_v10, 0.0 }
 0x6f7   :  { %1535 = vadd.xlane.f32.xlu0 %v1534_v33 }
 0x6f8   :  { %v1527_v11 = vpop.xlane.xlu1 %1526 }
 0x6f9   :  { %v1529_v12 = vmul.f32 0.03125, %v1527_v11 }
 0x6fb   :  { %v1531_v48 = vsub.f32 %v1519_v5, %v1529_v12 }
 0x6fd   :  { %v1533_v13 = vmul.f32 %v1531_v48, %v1531_v48 }
 0x6ff   :  { %v1537_v45 = vsel %vm21_vm0, %v1533_v13, 0.0 }
 0x700   :  { %1538 = vadd.xlane.f32.xlu0 %v1537_v45 }
 0x784   :  { %v1536_v19 = vpop.xlane.xlu0 %1535 }
 0x785   :  { %v1540_v20 = vmul.f32 0.03125, %v1536_v19 }
 0x787   :  { %v1542_v21 = vadd.f32 1e-12, %v1540_v20 }
 0x789   :  { %2071 = vrsqrt.f32 %v1542_v21 }
 0x78d   :  { %v1539_v22 = vpop.xlane.xlu0 %1538 }
 0x78e   :  { %v1541_v23 = vmul.f32 0.03125, %v1539_v22 }
 0x790   :  { %v1543_v24 = vadd.f32 1e-12, %v1541_v23 }
 0x792   :  { %2073 = vrsqrt.f32 %v1543_v24 }
 0x793   :  { %v2072_v25 = vpop.eup %2071 }
 0x794   :  { %v1546_v27 = vmul.f32 %v2072_v25, %v1530_v9 }
 0x796   :  { %v1552_v29 = vmul.f32 %v1808_v26, %v1546_v27 }
 0x798   :  { %v1558_v30 = vadd.f32 %v1809_v28, %v1552_v29 }
 0x79a   :  { %1969 = vmatprep.mubr.msk.f32.mxu0 %vm21_vm0, %v1558_v30 }
 0x79c   :  { %v2074_v31 = vpop.eup %2073 }
 0x79d   :  { %v1547_v32 = vmul.f32 %v2074_v31, %v1531_v48 }
 0x79f   :  { %v1553_v34 = vmul.f32 %v1808_v26, %v1547_v32 }
 0x7a1   :  { %v1559_v37 = vadd.f32 %v1809_v28, %v1553_v34 }
 0x7a3   :  { %1970 = vmatmul.mubr.msk.f32.vlgmr.msra.gmra.mrb[18].mxu0 %vm21_vm0, %v1559_v37 }
 0x876   :  { %v1971_v52 = vpop.f32.mrb[18].mxu0 }
 0x877   :  { %v1647_v53 = vadd.f32 %v1971_v52, %v1810_v51  ;;  %v1641_v54 = vpop.f32.mrb[19].mxu0 }
 0x878   :  { %v1642_v55 = vadd.f32 %v1810_v51, %v1641_v54 }
 0x879   :  { %v1651_v56 = vmax.f32 %v1647_v53, 0.0 }
 0x87a   :  { %v1650_v57 = vmax.f32 %v1642_v55, 0.0 }
 0x87b   :  { %1656 = vrot.lane.b32.xlu1 %v1651_v56, %s2105_s10 }
 0x87c   :  { %1654 = vrot.lane.b32.xlu0 %v1650_v57, %s2105_s10 }
 0x8ed   :  { %v1657_v58 = vpop.permute.xlu1 %1656 }
 0x8ee   :  { %v1655_v59 = vpop.permute.xlu0 %1654  ;;  %v1661_v61 = vmul.f32 %v1657_v58, %v1647_v53 }
 0x8ef   :  { %v1660_v60 = vmul.f32 %v1655_v59, %v1642_v55 }
 0x8f1   :  { %1988 = vmatprep.mubr.msk.f32.mxu1 %vm1675_vm5, %v1660_v60 }
 0x8f2   :  { %1989 = vmatmul.mubr.msk.f32.vlgmr.msra.gmra.mrb[16].mxu1 %vm1675_vm5, %v1661_v61 }
 0x8f3   :  { %2086 = shalt.err (!%p2083_p4)
}
 0x8f4   :  { %s2087_s10 = scalar_lea.hbm %s2424_s4, 1024 }
 0x8f5   :  { %p2088_p5 = scmp.ne.s32.totalorder %s2424_s4, %s2087_s10  ;;  %p2091_p6 = scmp.lt.u32.totalorder %s2087_s10, %s2424_s4 }
 0x8f7   :  { %p2093_p7 = pnand %p2091_p6, %p2088_p5 }
 0x8f9   :  { %2096 = shalt.err (!%p2093_p7)
}
 0x8fa   :  { %s2110_s26 = smov 128   ;;  %v1813_v62 = vld [vmem:[%s2422_s2 + $0x2] ss:$0 sm:$0xff] }
 0x8fb   :  { %1772 = dma.vmem_to_hbm [thread:$0]  %s1767_s0, 1024, %s2424_s4, [#allocation3], %s2110_s26, %s2110_s26, %s2106_s11  }
 0x9c5   :  { %v1990_v63 = vpop.f32.mrb[16].mxu1 }
 0x9c6   :  { %v1754_v0 = vadd.f32 %v1990_v63, %v1813_v62  ;;  %v1748_v1 = vpop.f32.mrb[17].mxu1 }
 0x9c7   :  { %v1749_v2 = vadd.f32 %v1813_v62, %v1748_v1 }
 0x9c8   :  { %1758 = vst.msk [vmem:[%s2423_s3 + $0x8] sm:$0xff] %vm21_vm0, %v1754_v0 }
 0x9c9   :  { %1757 = vst.msk [vmem:[%s2423_s3] sm:$0xff] %vm21_vm0, %v1749_v2 }
 0x9ca   :  { %2097 = dma.done.wait [#allocation3], 1024  }
 0x9cb   :  { %2098 = vsyncadd [#allocation3], 4294966272 }
 0x9cc   :  { %1778 = vsyncpa [#allocation3], 1 }

</bundles_post_ra>
